<compile_context>
chip_gen: v5e
topology: v5e:2x2
jax: 0.10.0
libtpu: 0.0.40
codegen_flags: <defaults>
</compile_context>

<pallas_src>
import functools

import jax
import jax.numpy as jnp
from jax import lax
from jax.experimental import pallas as pl
from jax.experimental.pallas import tpu as pltpu


# ----------------------------------------------------------------------------
# Kernel 1: flash-style multi-head attention, all heads per grid step.
# ----------------------------------------------------------------------------
def _attn_kernel(q_ref, k_ref, v_ref, o_ref, acc_ref, m_ref, l_ref, *,
                 num_heads, scale):
    # q_ref: (1, tq, C)   k_ref/v_ref: (1, tk, C)   o_ref: (1, tq, C)
    # acc_ref/m_ref/l_ref: (tq, C) f32 scratch; each head's running state lives
    # in its own D-wide lane stripe.
    j = pl.program_id(2)

    @pl.when(j == 0)
    def _init():
        m_ref[...] = jnp.full_like(m_ref, -jnp.inf)
        l_ref[...] = jnp.zeros_like(l_ref)
        acc_ref[...] = jnp.zeros_like(acc_ref)

    q = q_ref[0]                      # (tq, C), native dtype (bf16/f32)
    k = k_ref[0]                      # (tk, C)
    v = v_ref[0]                      # (tk, C)

    tq, C = q.shape
    D = C // num_heads

    for h in range(num_heads):
        lo, hi = h * D, (h + 1) * D
        qh = q[:, lo:hi] * scale                      # fold scale into q
        kh = k[:, lo:hi]
        vh = v[:, lo:hi]

        # scores (tq, tk): contract the last dims of both operands (no k.T).
        s = lax.dot_general(qh, kh, (((1,), (1,)), ((), ())),
                            preferred_element_type=jnp.float32)

        m_prev = m_ref[:, lo:lo + 1]                  # (tq, 1)
        l_prev = l_ref[:, lo:lo + 1]                  # (tq, 1)
        m_new = jnp.maximum(m_prev, jnp.max(s, axis=-1, keepdims=True))
        alpha = jnp.exp(m_prev - m_new)               # (tq, 1)
        p = jnp.exp(s - m_new)                        # (tq, tk) f32
        l_new = alpha * l_prev + jnp.sum(p, axis=-1, keepdims=True)

        pv = jnp.dot(p.astype(vh.dtype), vh,
                     preferred_element_type=jnp.float32)   # (tq, D)
        acc_ref[:, lo:hi] = alpha * acc_ref[:, lo:hi] + pv
        m_ref[:, lo:hi] = jnp.broadcast_to(m_new, (tq, D))
        l_ref[:, lo:hi] = jnp.broadcast_to(l_new, (tq, D))

    @pl.when(j == pl.num_programs(2) - 1)
    def _finalize():
        inv_l = pl.reciprocal(l_ref[...], approx=True)      # EUP slot
        o_ref[0] = (acc_ref[...] * inv_l).astype(o_ref.dtype)


# ----------------------------------------------------------------------------
# Kernel 2: output projection  x @ W^T + b   (nn.Linear(dim, dim)), row-tiled.
# ----------------------------------------------------------------------------
def _proj_kernel(x_ref, wt_ref, b_ref, o_ref):
    # x_ref: (tm, C)   wt_ref: (C, C) = W^T (in, out)   b_ref: (1, C)
    y = jnp.dot(x_ref[...], wt_ref[...], preferred_element_type=jnp.float32)
    o_ref[...] = (y + b_ref[...].astype(jnp.float32)).astype(o_ref.dtype)


def _pick_tile(n, preferred):
    return preferred if n % preferred == 0 else n


# ----------------------------------------------------------------------------
# Wrapper reproducing CrossAttention.forward
# ----------------------------------------------------------------------------
@functools.partial(jax.jit, static_argnames=("num_heads", "qk_scale"))
def cross_attention(q, k, v, proj_w, proj_b, *, num_heads, qk_scale=None):
    B, N, C = q.shape
    M = k.shape[1]
    assert C % num_heads == 0
    D = C // num_heads
    scale = float(qk_scale) if qk_scale is not None else float(D) ** (-0.5)

    tq = _pick_tile(N, 256)
    tk = _pick_tile(M, 512)

    attn_out = pl.pallas_call(
        functools.partial(_attn_kernel, num_heads=num_heads, scale=scale),
        out_shape=jax.ShapeDtypeStruct((B, N, C), q.dtype),
        grid=(B, N // tq, M // tk),
        in_specs=[
            pl.BlockSpec((1, tq, C), lambda b, i, j: (b, i, 0)),
            pl.BlockSpec((1, tk, C), lambda b, i, j: (b, j, 0)),
            pl.BlockSpec((1, tk, C), lambda b, i, j: (b, j, 0)),
        ],
        out_specs=pl.BlockSpec((1, tq, C), lambda b, i, j: (b, i, 0)),
        scratch_shapes=[
            pltpu.VMEM((tq, C), jnp.float32),   # output accumulator
            pltpu.VMEM((tq, C), jnp.float32),   # running max   (per-head stripes)
            pltpu.VMEM((tq, C), jnp.float32),   # running denom (per-head stripes)
        ],
        compiler_params=pltpu.CompilerParams(
            dimension_semantics=("parallel", "parallel", "arbitrary")),
    )(q, k, v)

    T = B * N
    tm = _pick_tile(T, 256)
    x2 = attn_out.reshape(T, C)
    w_t = proj_w.T                       # transpose once on the host
    b2 = proj_b.reshape(1, C)

    y = pl.pallas_call(
        _proj_kernel,
        out_shape=jax.ShapeDtypeStruct((T, C), q.dtype),
        grid=(T // tm,),
        in_specs=[
            pl.BlockSpec((tm, C), lambda i: (i, 0)),
            pl.BlockSpec((C, C), lambda i: (0, 0)),   # weight resident across rows
            pl.BlockSpec((1, C), lambda i: (0, 0)),
        ],
        out_specs=pl.BlockSpec((tm, C), lambda i: (i, 0)),
        compiler_params=pltpu.CompilerParams(
            dimension_semantics=("parallel",)),
    )(x2, w_t, b2)
    return y.reshape(B, N, C)


# Pure-JAX reference for a sanity check.
def cross_attention_ref(q, k, v, proj_w, proj_b, *, num_heads, qk_scale=None):
    B, N, C = q.shape
    M = k.shape[1]
    D = C // num_heads
    scale = qk_scale if qk_scale is not None else D ** (-0.5)
    qh = q.reshape(B, N, num_heads, D).transpose(0, 2, 1, 3)
    kh = k.reshape(B, M, num_heads, D).transpose(0, 2, 1, 3)
    vh = v.reshape(B, M, num_heads, D).transpose(0, 2, 1, 3)
    attn = jnp.einsum("bhnd,bhmd->bhnm", qh, kh) * scale
    attn = jax.nn.softmax(attn, axis=-1)
    x = jnp.einsum("bhnm,bhmd->bhnd", attn, vh)
    x = x.transpose(0, 2, 1, 3).reshape(B, N, C)
    return x @ proj_w.T + proj_b


if __name__ == "__main__":
    B, N, M, C, H = 2, 16, 16, 32, 4

    key = jax.random.PRNGKey(0)
    kq, kk, kv, kw, kb = jax.random.split(key, 5)
    q = jax.random.normal(kq, (B, N, C), dtype=jnp.float32)
    k = jax.random.normal(kk, (B, M, C), dtype=jnp.float32)
    v = jax.random.normal(kv, (B, M, C), dtype=jnp.float32)

    # Deterministic nn.Linear(dim, dim)-style init (uniform(-1/sqrt(C), 1/sqrt(C))).
    bound = 1.0 / float(C) ** 0.5
    proj_w = jax.random.uniform(kw, (C, C), minval=-bound, maxval=bound, dtype=jnp.float32)
    proj_b = jax.random.uniform(kb, (C,), minval=-bound, maxval=bound, dtype=jnp.float32)

    out = cross_attention(q, k, v, proj_w, proj_b, num_heads=H)
    out = jax.block_until_ready(out)

    ref = cross_attention_ref(q, k, v, proj_w, proj_b, num_heads=H)
    assert out.shape == (B, N, C)
    # approx (EUP) reciprocal in the softmax normalization loosens tolerance slightly.
    assert jnp.allclose(out, ref, atol=5e-3, rtol=5e-3), float(jnp.max(jnp.abs(out - ref)))

    print("KERNEL_OK")
</pallas_src>

<mosaic_0001>
module attributes {stable_mosaic.version = 11 : i64} {
  func.func @_proj_kernel(%arg0: i32, %arg1: memref<32x32xf32, #tpu.memory_space<vmem>>, %arg2: memref<32x32xf32, #tpu.memory_space<vmem>>, %arg3: memref<1x32xf32, #tpu.memory_space<vmem>>, %arg4: memref<32x32xf32, #tpu.memory_space<vmem>>) attributes {dimension_semantics = [#tpu.dimension_semantics<parallel>], iteration_bounds = array<i64: 1>, scalar_prefetch = 0 : i64, scratch_operands = 0 : i64, tpu.core_type = #tpu.core_type<tc>, window_params = [{transform_indices = @transform_0, window_bounds = array<i64: 32, 32>}, {pipeline_mode = #tpu.pipeline_mode<synchronous>, transform_indices = @transform_1, window_bounds = array<i64: 32, 32>}, {pipeline_mode = #tpu.pipeline_mode<synchronous>, transform_indices = @transform_2, window_bounds = array<i64: 1, 32>}, {transform_indices = @transform_3, window_bounds = array<i64: 32, 32>}]} {
    %c0 = arith.constant 0 : index
    %c0_0 = arith.constant 0 : index
    %0 = vector.load %arg1[%c0, %c0_0] : memref<32x32xf32, #tpu.memory_space<vmem>>, vector<32x32xf32>
    %c0_1 = arith.constant 0 : index
    %c0_2 = arith.constant 0 : index
    %1 = vector.load %arg2[%c0_1, %c0_2] : memref<32x32xf32, #tpu.memory_space<vmem>>, vector<32x32xf32>
    %cst = arith.constant dense<0.000000e+00> : vector<32x32xf32>
    %2 = tpu.matmul %0, %1, %cst {dimension_numbers = #tpu.dot_dimension_numbers<[1], [0], [0], [1], [0, 0, 1, 1], [], []>} : vector<32x32xf32>, vector<32x32xf32>, vector<32x32xf32> -> vector<32x32xf32>
    %c0_3 = arith.constant 0 : index
    %c0_4 = arith.constant 0 : index
    %3 = vector.load %arg3[%c0_3, %c0_4] : memref<1x32xf32, #tpu.memory_space<vmem>>, vector<1x32xf32>
    %4 = vector.broadcast %3 : vector<1x32xf32> to vector<32x32xf32>
    %5 = arith.addf %2, %4 : vector<32x32xf32>
    %c0_5 = arith.constant 0 : index
    %c0_6 = arith.constant 0 : index
    %6 = vector.load %arg4[%c0_5, %c0_6] : memref<32x32xf32, #tpu.memory_space<vmem>>, vector<32x32xf32>
    tpu.vector_store %arg4[%c0_5, %c0_6], %5 {strides = array<i32>} : memref<32x32xf32, #tpu.memory_space<vmem>>, vector<32x32xf32>,
    return
  }
  func.func @transform_0(%arg0: i32) -> (i32, i32) {
    %c0_i32 = arith.constant 0 : i32
    %c0_i32_0 = arith.constant 0 : i32
    return %arg0, %c0_i32 : i32, i32
  }
  func.func @transform_1(%arg0: i32) -> (i32, i32) {
    %c0_i32 = arith.constant 0 : i32
    %c0_i32_0 = arith.constant 0 : i32
    %c0_i32_1 = arith.constant 0 : i32
    return %c0_i32, %c0_i32_0 : i32, i32
  }
  func.func @transform_2(%arg0: i32) -> (i32, i32) {
    %c0_i32 = arith.constant 0 : i32
    %c0_i32_0 = arith.constant 0 : i32
    %c0_i32_1 = arith.constant 0 : i32
    return %c0_i32, %c0_i32_0 : i32, i32
  }
  func.func @transform_3(%arg0: i32) -> (i32, i32) {
    %c0_i32 = arith.constant 0 : i32
    %c0_i32_0 = arith.constant 0 : i32
    return %arg0, %c0_i32 : i32, i32
  }
}

module attributes {stable_mosaic.version = 11 : i64} {
  func.func @_attn_kernel(%arg0: i32, %arg1: i32, %arg2: i32, %arg3: memref<1x16x32xf32, #tpu.memory_space<vmem>>, %arg4: memref<1x16x32xf32, #tpu.memory_space<vmem>>, %arg5: memref<1x16x32xf32, #tpu.memory_space<vmem>>, %arg6: memref<1x16x32xf32, #tpu.memory_space<vmem>>, %arg7: memref<16x32xf32, #tpu.memory_space<vmem>>, %arg8: memref<16x32xf32, #tpu.memory_space<vmem>>, %arg9: memref<16x32xf32, #tpu.memory_space<vmem>>) attributes {dimension_semantics = [#tpu.dimension_semantics<parallel>, #tpu.dimension_semantics<parallel>, #tpu.dimension_semantics<arbitrary>], iteration_bounds = array<i64: 2, 1, 1>, scalar_prefetch = 0 : i64, scratch_operands = 3 : i64, tpu.core_type = #tpu.core_type<tc>, window_params = [{transform_indices = @transform_0, window_bounds = array<i64: 1, 16, 32>}, {transform_indices = @transform_1, window_bounds = array<i64: 1, 16, 32>}, {transform_indices = @transform_2, window_bounds = array<i64: 1, 16, 32>}, {transform_indices = @transform_3, window_bounds = array<i64: 1, 16, 32>}]} {
    %c0_i32 = arith.constant 0 : i32
    %0 = arith.cmpi eq, %arg2, %c0_i32 : i32
    %1 = arith.extui %0 : i1 to i32
    %c0_i32_0 = arith.constant 0 : i32
    %2 = arith.cmpi ne, %1, %c0_i32_0 : i32
    scf.if %2 {
      %cst_75 = arith.constant 0xFF800000 : f32
      %140 = vector.broadcast %cst_75 : f32 to vector<16x32xf32>
      %c0_76 = arith.constant 0 : index
      %c0_77 = arith.constant 0 : index
      %141 = vector.load %arg8[%c0_76, %c0_77] : memref<16x32xf32, #tpu.memory_space<vmem>>, vector<16x32xf32>
      tpu.vector_store %arg8[%c0_76, %c0_77], %140 {strides = array<i32>} : memref<16x32xf32, #tpu.memory_space<vmem>>, vector<16x32xf32>,
      %cst_78 = arith.constant 0.000000e+00 : f32
      %142 = vector.broadcast %cst_78 : f32 to vector<16x32xf32>
      %c0_79 = arith.constant 0 : index
      %c0_80 = arith.constant 0 : index
      %143 = vector.load %arg9[%c0_79, %c0_80] : memref<16x32xf32, #tpu.memory_space<vmem>>, vector<16x32xf32>
      tpu.vector_store %arg9[%c0_79, %c0_80], %142 {strides = array<i32>} : memref<16x32xf32, #tpu.memory_space<vmem>>, vector<16x32xf32>,
      %cst_81 = arith.constant 0.000000e+00 : f32
      %144 = vector.broadcast %cst_81 : f32 to vector<16x32xf32>
      %c0_82 = arith.constant 0 : index
      %c0_83 = arith.constant 0 : index
      %145 = vector.load %arg7[%c0_82, %c0_83] : memref<16x32xf32, #tpu.memory_space<vmem>>, vector<16x32xf32>
      tpu.vector_store %arg7[%c0_82, %c0_83], %144 {strides = array<i32>} : memref<16x32xf32, #tpu.memory_space<vmem>>, vector<16x32xf32>,
    } else {
    }
    %c0 = arith.constant 0 : index
    %c0_1 = arith.constant 0 : index
    %c0_2 = arith.constant 0 : index
    %3 = vector.load %arg3[%c0, %c0_1, %c0_2] : memref<1x16x32xf32, #tpu.memory_space<vmem>>, vector<1x16x32xf32>
    %4 = vector.shape_cast %3 : vector<1x16x32xf32> to vector<16x32xf32>
    %c0_3 = arith.constant 0 : index
    %c0_4 = arith.constant 0 : index
    %c0_5 = arith.constant 0 : index
    %5 = vector.load %arg4[%c0_3, %c0_4, %c0_5] : memref<1x16x32xf32, #tpu.memory_space<vmem>>, vector<1x16x32xf32>
    %6 = vector.shape_cast %5 : vector<1x16x32xf32> to vector<16x32xf32>
    %c0_6 = arith.constant 0 : index
    %c0_7 = arith.constant 0 : index
    %c0_8 = arith.constant 0 : index
    %7 = vector.load %arg5[%c0_6, %c0_7, %c0_8] : memref<1x16x32xf32, #tpu.memory_space<vmem>>, vector<1x16x32xf32>
    %8 = vector.shape_cast %7 : vector<1x16x32xf32> to vector<16x32xf32>
    %9 = vector.extract_strided_slice %4 {offsets = [0, 0], sizes = [16, 8], strides = [1, 1]} : vector<16x32xf32> to vector<16x8xf32>
    %cst = arith.constant 0.353553385 : f32
    %10 = vector.broadcast %cst : f32 to vector<16x8xf32>
    %11 = arith.mulf %9, %10 : vector<16x8xf32>
    %12 = vector.extract_strided_slice %6 {offsets = [0, 0], sizes = [16, 8], strides = [1, 1]} : vector<16x32xf32> to vector<16x8xf32>
    %13 = vector.extract_strided_slice %8 {offsets = [0, 0], sizes = [16, 8], strides = [1, 1]} : vector<16x32xf32> to vector<16x8xf32>
    %cst_9 = arith.constant dense<0.000000e+00> : vector<16x16xf32>
    %14 = tpu.matmul %11, %12, %cst_9 {dimension_numbers = #tpu.dot_dimension_numbers<[1], [1], [0], [0], [0, 0, 1, 0], [], []>} : vector<16x8xf32>, vector<16x8xf32>, vector<16x16xf32> -> vector<16x16xf32>
    %c0_10 = arith.constant 0 : index
    %c0_11 = arith.constant 0 : index
    %15 = vector.load %arg8[%c0_10, %c0_11] : memref<16x32xf32, #tpu.memory_space<vmem>>, vector<16x1xf32>
    %c0_12 = arith.constant 0 : index
    %c0_13 = arith.constant 0 : index
    %16 = vector.load %arg9[%c0_12, %c0_13] : memref<16x32xf32, #tpu.memory_space<vmem>>, vector<16x1xf32>
    %cst_14 = arith.constant dense<0xFF800000> : vector<16xf32>
    %17 = vector.multi_reduction <maximumf>, %14, %cst_14 [1] : vector<16x16xf32> to vector<16xf32>
    %18 = vector.shape_cast %17 : vector<16xf32> to vector<16x1xf32>
    %19 = arith.maximumf %15, %18 : vector<16x1xf32>
    %20 = arith.subf %15, %19 : vector<16x1xf32>
    %21 = math.exp %20 : vector<16x1xf32>
    %22 = vector.broadcast %19 : vector<16x1xf32> to vector<16x16xf32>
    %23 = arith.subf %14, %22 : vector<16x16xf32>
    %24 = math.exp %23 : vector<16x16xf32>
    %25 = arith.mulf %21, %16 : vector<16x1xf32>
    %cst_15 = arith.constant dense<0.000000e+00> : vector<16xf32>
    %26 = vector.multi_reduction <add>, %24, %cst_15 [1] : vector<16x16xf32> to vector<16xf32>
    %27 = vector.shape_cast %26 : vector<16xf32> to vector<16x1xf32>
    %28 = arith.addf %25, %27 : vector<16x1xf32>
    %cst_16 = arith.constant dense<0.000000e+00> : vector<16x8xf32>
    %29 = tpu.matmul %24, %13, %cst_16 {dimension_numbers = #tpu.dot_dimension_numbers<[1], [0], [0], [1], [0, 0, 1, 1], [], []>} : vector<16x16xf32>, vector<16x8xf32>, vector<16x8xf32> -> vector<16x8xf32>
    %c0_17 = arith.constant 0 : index
    %c0_18 = arith.constant 0 : index
    %30 = vector.load %arg7[%c0_17, %c0_18] : memref<16x32xf32, #tpu.memory_space<vmem>>, vector<16x8xf32>
    %31 = vector.broadcast %21 : vector<16x1xf32> to vector<16x8xf32>
    %32 = arith.mulf %31, %30 : vector<16x8xf32>
    %33 = arith.addf %32, %29 : vector<16x8xf32>
    %c0_19 = arith.constant 0 : index
    %c0_20 = arith.constant 0 : index
    %34 = vector.load %arg7[%c0_19, %c0_20] : memref<16x32xf32, #tpu.memory_space<vmem>>, vector<16x8xf32>
    tpu.vector_store %arg7[%c0_19, %c0_20], %33 {strides = array<i32>} : memref<16x32xf32, #tpu.memory_space<vmem>>, vector<16x8xf32>,
    %35 = vector.shape_cast %19 : vector<16x1xf32> to vector<16x1xf32>
    %36 = vector.broadcast %35 : vector<16x1xf32> to vector<16x8xf32>
    %c0_21 = arith.constant 0 : index
    %c0_22 = arith.constant 0 : index
    %37 = vector.load %arg8[%c0_21, %c0_22] : memref<16x32xf32, #tpu.memory_space<vmem>>, vector<16x8xf32>
    tpu.vector_store %arg8[%c0_21, %c0_22], %36 {strides = array<i32>} : memref<16x32xf32, #tpu.memory_space<vmem>>, vector<16x8xf32>,
    %38 = vector.shape_cast %28 : vector<16x1xf32> to vector<16x1xf32>
    %39 = vector.broadcast %38 : vector<16x1xf32> to vector<16x8xf32>
    %c0_23 = arith.constant 0 : index
    %c0_24 = arith.constant 0 : index
    %40 = vector.load %arg9[%c0_23, %c0_24] : memref<16x32xf32, #tpu.memory_space<vmem>>, vector<16x8xf32>
    tpu.vector_store %arg9[%c0_23, %c0_24], %39 {strides = array<i32>} : memref<16x32xf32, #tpu.memory_space<vmem>>, vector<16x8xf32>,
    %41 = vector.extract_strided_slice %4 {offsets = [0, 8], sizes = [16, 8], strides = [1, 1]} : vector<16x32xf32> to vector<16x8xf32>
    %cst_25 = arith.constant 0.353553385 : f32
    %42 = vector.broadcast %cst_25 : f32 to vector<16x8xf32>
    %43 = arith.mulf %41, %42 : vector<16x8xf32>
    %44 = vector.extract_strided_slice %6 {offsets = [0, 8], sizes = [16, 8], strides = [1, 1]} : vector<16x32xf32> to vector<16x8xf32>
    %45 = vector.extract_strided_slice %8 {offsets = [0, 8], sizes = [16, 8], strides = [1, 1]} : vector<16x32xf32> to vector<16x8xf32>
    %cst_26 = arith.constant dense<0.000000e+00> : vector<16x16xf32>
    %46 = tpu.matmul %43, %44, %cst_26 {dimension_numbers = #tpu.dot_dimension_numbers<[1], [1], [0], [0], [0, 0, 1, 0], [], []>} : vector<16x8xf32>, vector<16x8xf32>, vector<16x16xf32> -> vector<16x16xf32>
    %c0_27 = arith.constant 0 : index
    %c8 = arith.constant 8 : index
    %47 = vector.load %arg8[%c0_27, %c8] : memref<16x32xf32, #tpu.memory_space<vmem>>, vector<16x1xf32>
    %c0_28 = arith.constant 0 : index
    %c8_29 = arith.constant 8 : index
    %48 = vector.load %arg9[%c0_28, %c8_29] : memref<16x32xf32, #tpu.memory_space<vmem>>, vector<16x1xf32>
    %cst_30 = arith.constant dense<0xFF800000> : vector<16xf32>
    %49 = vector.multi_reduction <maximumf>, %46, %cst_30 [1] : vector<16x16xf32> to vector<16xf32>
    %50 = vector.shape_cast %49 : vector<16xf32> to vector<16x1xf32>
    %51 = arith.maximumf %47, %50 : vector<16x1xf32>
    %52 = arith.subf %47, %51 : vector<16x1xf32>
    %53 = math.exp %52 : vector<16x1xf32>
    %54 = vector.broadcast %51 : vector<16x1xf32> to vector<16x16xf32>
    %55 = arith.subf %46, %54 : vector<16x16xf32>
    %56 = math.exp %55 : vector<16x16xf32>
    %57 = arith.mulf %53, %48 : vector<16x1xf32>
    %cst_31 = arith.constant dense<0.000000e+00> : vector<16xf32>
    %58 = vector.multi_reduction <add>, %56, %cst_31 [1] : vector<16x16xf32> to vector<16xf32>
    %59 = vector.shape_cast %58 : vector<16xf32> to vector<16x1xf32>
    %60 = arith.addf %57, %59 : vector<16x1xf32>
    %cst_32 = arith.constant dense<0.000000e+00> : vector<16x8xf32>
    %61 = tpu.matmul %56, %45, %cst_32 {dimension_numbers = #tpu.dot_dimension_numbers<[1], [0], [0], [1], [0, 0, 1, 1], [], []>} : vector<16x16xf32>, vector<16x8xf32>, vector<16x8xf32> -> vector<16x8xf32>
    %c0_33 = arith.constant 0 : index
    %c8_34 = arith.constant 8 : index
    %62 = vector.load %arg7[%c0_33, %c8_34] : memref<16x32xf32, #tpu.memory_space<vmem>>, vector<16x8xf32>
    %63 = vector.broadcast %53 : vector<16x1xf32> to vector<16x8xf32>
    %64 = arith.mulf %63, %62 : vector<16x8xf32>
    %65 = arith.addf %64, %61 : vector<16x8xf32>
    %c0_35 = arith.constant 0 : index
    %c8_36 = arith.constant 8 : index
    %66 = vector.load %arg7[%c0_35, %c8_36] : memref<16x32xf32, #tpu.memory_space<vmem>>, vector<16x8xf32>
    tpu.vector_store %arg7[%c0_35, %c8_36], %65 {strides = array<i32>} : memref<16x32xf32, #tpu.memory_space<vmem>>, vector<16x8xf32>,
    %67 = vector.shape_cast %51 : vector<16x1xf32> to vector<16x1xf32>
    %68 = vector.broadcast %67 : vector<16x1xf32> to vector<16x8xf32>
    %c0_37 = arith.constant 0 : index
    %c8_38 = arith.constant 8 : index
    %69 = vector.load %arg8[%c0_37, %c8_38] : memref<16x32xf32, #tpu.memory_space<vmem>>, vector<16x8xf32>
    tpu.vector_store %arg8[%c0_37, %c8_38], %68 {strides = array<i32>} : memref<16x32xf32, #tpu.memory_space<vmem>>, vector<16x8xf32>,
    %70 = vector.shape_cast %60 : vector<16x1xf32> to vector<16x1xf32>
    %71 = vector.broadcast %70 : vector<16x1xf32> to vector<16x8xf32>
    %c0_39 = arith.constant 0 : index
    %c8_40 = arith.constant 8 : index
    %72 = vector.load %arg9[%c0_39, %c8_40] : memref<16x32xf32, #tpu.memory_space<vmem>>, vector<16x8xf32>
    tpu.vector_store %arg9[%c0_39, %c8_40], %71 {strides = array<i32>} : memref<16x32xf32, #tpu.memory_space<vmem>>, vector<16x8xf32>,
    %73 = vector.extract_strided_slice %4 {offsets = [0, 16], sizes = [16, 8], strides = [1, 1]} : vector<16x32xf32> to vector<16x8xf32>
    %cst_41 = arith.constant 0.353553385 : f32
    %74 = vector.broadcast %cst_41 : f32 to vector<16x8xf32>
    %75 = arith.mulf %73, %74 : vector<16x8xf32>
    %76 = vector.extract_strided_slice %6 {offsets = [0, 16], sizes = [16, 8], strides = [1, 1]} : vector<16x32xf32> to vector<16x8xf32>
    %77 = vector.extract_strided_slice %8 {offsets = [0, 16], sizes = [16, 8], strides = [1, 1]} : vector<16x32xf32> to vector<16x8xf32>
    %cst_42 = arith.constant dense<0.000000e+00> : vector<16x16xf32>
    %78 = tpu.matmul %75, %76, %cst_42 {dimension_numbers = #tpu.dot_dimension_numbers<[1], [1], [0], [0], [0, 0, 1, 0], [], []>} : vector<16x8xf32>, vector<16x8xf32>, vector<16x16xf32> -> vector<16x16xf32>
    %c0_43 = arith.constant 0 : index
    %c16 = arith.constant 16 : index
    %79 = vector.load %arg8[%c0_43, %c16] : memref<16x32xf32, #tpu.memory_space<vmem>>, vector<16x1xf32>
    %c0_44 = arith.constant 0 : index
    %c16_45 = arith.constant 16 : index
    %80 = vector.load %arg9[%c0_44, %c16_45] : memref<16x32xf32, #tpu.memory_space<vmem>>, vector<16x1xf32>
    %cst_46 = arith.constant dense<0xFF800000> : vector<16xf32>
    %81 = vector.multi_reduction <maximumf>, %78, %cst_46 [1] : vector<16x16xf32> to vector<16xf32>
    %82 = vector.shape_cast %81 : vector<16xf32> to vector<16x1xf32>
    %83 = arith.maximumf %79, %82 : vector<16x1xf32>
    %84 = arith.subf %79, %83 : vector<16x1xf32>
    %85 = math.exp %84 : vector<16x1xf32>
    %86 = vector.broadcast %83 : vector<16x1xf32> to vector<16x16xf32>
    %87 = arith.subf %78, %86 : vector<16x16xf32>
    %88 = math.exp %87 : vector<16x16xf32>
    %89 = arith.mulf %85, %80 : vector<16x1xf32>
    %cst_47 = arith.constant dense<0.000000e+00> : vector<16xf32>
    %90 = vector.multi_reduction <add>, %88, %cst_47 [1] : vector<16x16xf32> to vector<16xf32>
    %91 = vector.shape_cast %90 : vector<16xf32> to vector<16x1xf32>
    %92 = arith.addf %89, %91 : vector<16x1xf32>
    %cst_48 = arith.constant dense<0.000000e+00> : vector<16x8xf32>
    %93 = tpu.matmul %88, %77, %cst_48 {dimension_numbers = #tpu.dot_dimension_numbers<[1], [0], [0], [1], [0, 0, 1, 1], [], []>} : vector<16x16xf32>, vector<16x8xf32>, vector<16x8xf32> -> vector<16x8xf32>
    %c0_49 = arith.constant 0 : index
    %c16_50 = arith.constant 16 : index
    %94 = vector.load %arg7[%c0_49, %c16_50] : memref<16x32xf32, #tpu.memory_space<vmem>>, vector<16x8xf32>
    %95 = vector.broadcast %85 : vector<16x1xf32> to vector<16x8xf32>
    %96 = arith.mulf %95, %94 : vector<16x8xf32>
    %97 = arith.addf %96, %93 : vector<16x8xf32>
    %c0_51 = arith.constant 0 : index
    %c16_52 = arith.constant 16 : index
    %98 = vector.load %arg7[%c0_51, %c16_52] : memref<16x32xf32, #tpu.memory_space<vmem>>, vector<16x8xf32>
    tpu.vector_store %arg7[%c0_51, %c16_52], %97 {strides = array<i32>} : memref<16x32xf32, #tpu.memory_space<vmem>>, vector<16x8xf32>,
    %99 = vector.shape_cast %83 : vector<16x1xf32> to vector<16x1xf32>
    %100 = vector.broadcast %99 : vector<16x1xf32> to vector<16x8xf32>
    %c0_53 = arith.constant 0 : index
    %c16_54 = arith.constant 16 : index
    %101 = vector.load %arg8[%c0_53, %c16_54] : memref<16x32xf32, #tpu.memory_space<vmem>>, vector<16x8xf32>
    tpu.vector_store %arg8[%c0_53, %c16_54], %100 {strides = array<i32>} : memref<16x32xf32, #tpu.memory_space<vmem>>, vector<16x8xf32>,
    %102 = vector.shape_cast %92 : vector<16x1xf32> to vector<16x1xf32>
    %103 = vector.broadcast %102 : vector<16x1xf32> to vector<16x8xf32>
    %c0_55 = arith.constant 0 : index
    %c16_56 = arith.constant 16 : index
    %104 = vector.load %arg9[%c0_55, %c16_56] : memref<16x32xf32, #tpu.memory_space<vmem>>, vector<16x8xf32>
    tpu.vector_store %arg9[%c0_55, %c16_56], %103 {strides = array<i32>} : memref<16x32xf32, #tpu.memory_space<vmem>>, vector<16x8xf32>,
    %105 = vector.extract_strided_slice %4 {offsets = [0, 24], sizes = [16, 8], strides = [1, 1]} : vector<16x32xf32> to vector<16x8xf32>
    %cst_57 = arith.constant 0.353553385 : f32
    %106 = vector.broadcast %cst_57 : f32 to vector<16x8xf32>
    %107 = arith.mulf %105, %106 : vector<16x8xf32>
    %108 = vector.extract_strided_slice %6 {offsets = [0, 24], sizes = [16, 8], strides = [1, 1]} : vector<16x32xf32> to vector<16x8xf32>
    %109 = vector.extract_strided_slice %8 {offsets = [0, 24], sizes = [16, 8], strides = [1, 1]} : vector<16x32xf32> to vector<16x8xf32>
    %cst_58 = arith.constant dense<0.000000e+00> : vector<16x16xf32>
    %110 = tpu.matmul %107, %108, %cst_58 {dimension_numbers = #tpu.dot_dimension_numbers<[1], [1], [0], [0], [0, 0, 1, 0], [], []>} : vector<16x8xf32>, vector<16x8xf32>, vector<16x16xf32> -> vector<16x16xf32>
    %c0_59 = arith.constant 0 : index
    %c24 = arith.constant 24 : index
    %111 = vector.load %arg8[%c0_59, %c24] : memref<16x32xf32, #tpu.memory_space<vmem>>, vector<16x1xf32>
    %c0_60 = arith.constant 0 : index
    %c24_61 = arith.constant 24 : index
    %112 = vector.load %arg9[%c0_60, %c24_61] : memref<16x32xf32, #tpu.memory_space<vmem>>, vector<16x1xf32>
    %cst_62 = arith.constant dense<0xFF800000> : vector<16xf32>
    %113 = vector.multi_reduction <maximumf>, %110, %cst_62 [1] : vector<16x16xf32> to vector<16xf32>
    %114 = vector.shape_cast %113 : vector<16xf32> to vector<16x1xf32>
    %115 = arith.maximumf %111, %114 : vector<16x1xf32>
    %116 = arith.subf %111, %115 : vector<16x1xf32>
    %117 = math.exp %116 : vector<16x1xf32>
    %118 = vector.broadcast %115 : vector<16x1xf32> to vector<16x16xf32>
    %119 = arith.subf %110, %118 : vector<16x16xf32>
    %120 = math.exp %119 : vector<16x16xf32>
    %121 = arith.mulf %117, %112 : vector<16x1xf32>
    %cst_63 = arith.constant dense<0.000000e+00> : vector<16xf32>
    %122 = vector.multi_reduction <add>, %120, %cst_63 [1] : vector<16x16xf32> to vector<16xf32>
    %123 = vector.shape_cast %122 : vector<16xf32> to vector<16x1xf32>
    %124 = arith.addf %121, %123 : vector<16x1xf32>
    %cst_64 = arith.constant dense<0.000000e+00> : vector<16x8xf32>
    %125 = tpu.matmul %120, %109, %cst_64 {dimension_numbers = #tpu.dot_dimension_numbers<[1], [0], [0], [1], [0, 0, 1, 1], [], []>} : vector<16x16xf32>, vector<16x8xf32>, vector<16x8xf32> -> vector<16x8xf32>
    %c0_65 = arith.constant 0 : index
    %c24_66 = arith.constant 24 : index
    %126 = vector.load %arg7[%c0_65, %c24_66] : memref<16x32xf32, #tpu.memory_space<vmem>>, vector<16x8xf32>
    %127 = vector.broadcast %117 : vector<16x1xf32> to vector<16x8xf32>
    %128 = arith.mulf %127, %126 : vector<16x8xf32>
    %129 = arith.addf %128, %125 : vector<16x8xf32>
    %c0_67 = arith.constant 0 : index
    %c24_68 = arith.constant 24 : index
    %130 = vector.load %arg7[%c0_67, %c24_68] : memref<16x32xf32, #tpu.memory_space<vmem>>, vector<16x8xf32>
    tpu.vector_store %arg7[%c0_67, %c24_68], %129 {strides = array<i32>} : memref<16x32xf32, #tpu.memory_space<vmem>>, vector<16x8xf32>,
    %131 = vector.shape_cast %115 : vector<16x1xf32> to vector<16x1xf32>
    %132 = vector.broadcast %131 : vector<16x1xf32> to vector<16x8xf32>
    %c0_69 = arith.constant 0 : index
    %c24_70 = arith.constant 24 : index
    %133 = vector.load %arg8[%c0_69, %c24_70] : memref<16x32xf32, #tpu.memory_space<vmem>>, vector<16x8xf32>
    tpu.vector_store %arg8[%c0_69, %c24_70], %132 {strides = array<i32>} : memref<16x32xf32, #tpu.memory_space<vmem>>, vector<16x8xf32>,
    %134 = vector.shape_cast %124 : vector<16x1xf32> to vector<16x1xf32>
    %135 = vector.broadcast %134 : vector<16x1xf32> to vector<16x8xf32>
    %c0_71 = arith.constant 0 : index
    %c24_72 = arith.constant 24 : index
    %136 = vector.load %arg9[%c0_71, %c24_72] : memref<16x32xf32, #tpu.memory_space<vmem>>, vector<16x8xf32>
    tpu.vector_store %arg9[%c0_71, %c24_72], %135 {strides = array<i32>} : memref<16x32xf32, #tpu.memory_space<vmem>>, vector<16x8xf32>,
    %c0_i32_73 = arith.constant 0 : i32
    %137 = arith.cmpi eq, %arg2, %c0_i32_73 : i32
    %138 = arith.extui %137 : i1 to i32
    %c0_i32_74 = arith.constant 0 : i32
    %139 = arith.cmpi ne, %138, %c0_i32_74 : i32
    scf.if %139 {
      %c0_75 = arith.constant 0 : index
      %c0_76 = arith.constant 0 : index
      %140 = vector.load %arg9[%c0_75, %c0_76] : memref<16x32xf32, #tpu.memory_space<vmem>>, vector<16x32xf32>
      %141 = tpu.reciprocal %140 {approx = true} : vector<16x32xf32> -> vector<16x32xf32>
      %c0_77 = arith.constant 0 : index
      %c0_78 = arith.constant 0 : index
      %142 = vector.load %arg7[%c0_77, %c0_78] : memref<16x32xf32, #tpu.memory_space<vmem>>, vector<16x32xf32>
      %143 = arith.mulf %142, %141 : vector<16x32xf32>
      %c0_79 = arith.constant 0 : index
      %c0_80 = arith.constant 0 : index
      %c0_81 = arith.constant 0 : index
      %144 = vector.load %arg6[%c0_79, %c0_80, %c0_81] : memref<1x16x32xf32, #tpu.memory_space<vmem>>, vector<1x16x32xf32>
      %145 = vector.shape_cast %144 : vector<1x16x32xf32> to vector<16x32xf32>
      %146 = vector.shape_cast %143 : vector<16x32xf32> to vector<1x16x32xf32>
      tpu.vector_store %arg6[%c0_79, %c0_80, %c0_81], %146 {strides = array<i32>} : memref<1x16x32xf32, #tpu.memory_space<vmem>>, vector<1x16x32xf32>,
    } else {
    }
    return
  }
  func.func @transform_0(%arg0: i32, %arg1: i32, %arg2: i32) -> (i32, i32, i32) {
    %c0_i32 = arith.constant 0 : i32
    %c0_i32_0 = arith.constant 0 : i32
    return %arg0, %arg1, %c0_i32 : i32, i32, i32
  }
  func.func @transform_1(%arg0: i32, %arg1: i32, %arg2: i32) -> (i32, i32, i32) {
    %c0_i32 = arith.constant 0 : i32
    %c0_i32_0 = arith.constant 0 : i32
    return %arg0, %arg2, %c0_i32 : i32, i32, i32
  }
  func.func @transform_2(%arg0: i32, %arg1: i32, %arg2: i32) -> (i32, i32, i32) {
    %c0_i32 = arith.constant 0 : i32
    %c0_i32_0 = arith.constant 0 : i32
    return %arg0, %arg2, %c0_i32 : i32, i32, i32
  }
  func.func @transform_3(%arg0: i32, %arg1: i32, %arg2: i32) -> (i32, i32, i32) {
    %c0_i32 = arith.constant 0 : i32
    %c0_i32_0 = arith.constant 0 : i32
    return %arg0, %arg1, %c0_i32 : i32, i32, i32
  }
}

</mosaic_0001>

<bundles_post_ra>
// kernel: cross_attention.3
= control target key start
LH: loop header
LB: loop body
LE: loop exit
PB: predicated region body
PF: predicated region fallthrough
CT: control target
= control target key end

     0   :  { %s198_s0 = inlined_call_operand.vmem [shape: f32[32,32], index: 0, kind: input, shape index: {}]   ;;  %s199_s1 = inlined_call_operand.vmem [shape: f32[32,32], index: 1, kind: input, shape index: {}]   ;;  %s200_s2 = inlined_call_operand.vmem [shape: f32[1,32], index: 2, kind: input, shape index: {}]   ;;  %s201_s3 = inlined_call_operand.hbm [shape: f32[32,32], index: 3, kind: output, shape index: {}]  }
   0x1   :  { %v22_v0 = vld [vmem:[%s199_s1 + $0x18] sm:$0xff]  ;;  %v21_v1 = vld [vmem:[%s199_s1 + $0x10] sm:$0xff]  ;;  %v20_v2 = vld [vmem:[%s199_s1 + $0x8] sm:$0xff] }
   0x2   :  { %96 = vmatpush.msra.mxu2 %v22_v0  ;;  %97 = vmatpush.msra.mxu3 %v22_v0 }
   0x3   :  { %52 = vmatpush.msra.mxu0 %v22_v0  ;;  %95 = vmatpush.msra.mxu1 %v22_v0 }
   0x4   :  { %99 = vmatpush.msra.mxu2 %v21_v1  ;;  %100 = vmatpush.msra.mxu3 %v21_v1 }
   0x5   :  { %8 = vsyncpa [#allocation3], 0  ;;  %v19_v3 = vld [vmem:[%s199_s1] sm:$0xff]  ;;  %53 = vmatpush.msra.mxu0 %v21_v1  ;;  %98 = vmatpush.msra.mxu1 %v21_v1  ;;  %v17_v4 = vld [vmem:[%s198_s0 + $0x10] sm:$0xff]  ;;  %vm27_vm0 = vcmask 261120   ;;  %s137_s29 = smov [#allocation2]  }
   0x6   :  { %102 = vmatpush.msra.mxu2 %v20_v2  ;;  %103 = vmatpush.msra.mxu3 %v20_v2  ;;  %v18_v5 = vld [vmem:[%s198_s0 + $0x18] sm:$0xff]  ;;  %v15_v6 = vld [vmem:[%s198_s0] sm:$0xff]  ;;  %v16_v7 = vld [vmem:[%s198_s0 + $0x8] sm:$0xff]  ;;  %s77_s0 = sshll.u32 %s137_s29, 4  ;;  %s79_s5 = sshll.u32 %s201_s3, 4  ;;  %s78_s0 = int_to_ptr.vmem [resolvable:$true] %s77_s0  ;;  %s80_s5 = int_to_ptr.hbm [resolvable:$true] %s79_s5 }
   0x7   :  { %54 = vmatpush.msra.mxu0 %v20_v2  ;;  %101 = vmatpush.msra.mxu1 %v20_v2  ;;  %v110_v8 = vld [vmem:[%s200_s2] ss:$0 sm:$0xff]  ;;  %s138_s2 = smov 128   ;;  %s139_s6 = smov 8  }
   0x8   :  { %105 = vmatpush.msra.mxu2 %v19_v3  ;;  %106 = vmatpush.msra.mxu3 %v19_v3 }
   0x9   :  { %93 = vmatmul.msk.f32.vlgmr.msra.gmra.mxu2 %vm27_vm0, %v17_v4  ;;  %94 = vmatmul.msk.f32.vlgmr.msra.gmra.mxu3 %vm27_vm0, %v18_v5 }
   0xa   :  { %55 = vmatpush.msra.mxu0 %v19_v3  ;;  %104 = vmatpush.msra.mxu1 %v19_v3 }
   0xb   :  { %91 = vmatmul.msk.f32.vlgmr.msra.gmra.mxu0 %vm27_vm0, %v15_v6  ;;  %92 = vmatmul.msk.f32.vlgmr.msra.gmra.mxu1 %vm27_vm0, %v16_v7 }
  0x88   :  { %v57_v9 = vpop.f32.mrf.mxu0  ;;  %v60_v10 = vpop.f32.mrf.mxu1 }
  0x89   :  { %v58_v11 = vadd.f32 %v110_v8, %v57_v9  ;;  %v61_v12 = vadd.f32 %v110_v8, %v60_v10 }
  0x8b   :  { %69 = vst.msk [vmem:[#allocation2] sm:$0xff] %vm27_vm0, %v58_v11 }
  0x8c   :  { %70 = vst.msk [vmem:[#allocation2 + $0x8] sm:$0xff] %vm27_vm0, %v61_v12  ;;  %v63_v13 = vpop.f32.mrf.mxu2  ;;  %v66_v14 = vpop.f32.mrf.mxu3 }
  0x8d   :  { %v64_v15 = vadd.f32 %v110_v8, %v63_v13  ;;  %v67_v16 = vadd.f32 %v110_v8, %v66_v14 }
  0x8f   :  { %71 = vst.msk [vmem:[#allocation2 + $0x10] sm:$0xff] %vm27_vm0, %v64_v15 }
  0x90   :  { %72 = vst.msk [vmem:[#allocation2 + $0x18] sm:$0xff] %vm27_vm0, %v67_v16 }
  0x91   :  { %85 = dma.vmem_to_hbm [thread:$0]  %s78_s0, 512, %s80_s5, [#allocation3], %s138_s2, %s138_s2, %s139_s6  }
  0x92   :  { %135 = dma.done.wait [#allocation3], 512  }
  0x93   :  { %136 = vsyncadd [#allocation3], 4294966784 }
  0x94   :  { %90 = vsyncpa [#allocation3], 1 }

// kernel: cross_attention.2
= control target key start
LH: loop header
LB: loop body
LE: loop exit
PB: predicated region body
PF: predicated region fallthrough
CT: control target
= control target key end

     0   :  { %s1841_s0 = inlined_call_operand.hbm [shape: f32[2,16,32], index: 0, kind: input, shape index: {}]   ;;  %s1842_s1 = inlined_call_operand.hbm [shape: f32[2,16,32], index: 1, kind: input, shape index: {}]   ;;  %s1843_s2 = inlined_call_operand.hbm [shape: f32[2,16,32], index: 2, kind: input, shape index: {}]   ;;  %s1844_s3 = inlined_call_operand.vmem [shape: f32[2,16,32], index: 3, kind: output, shape index: {}]  }
   0x1   :  { %1847 = sst [smem:[#allocation13_spill]] %s1842_s1 }
   0x2   :  { %8 = vsyncpa [#allocation6], 0 }
   0x3   :  { %10 = vsyncpa [#allocation6 + $0x1], 0 }
   0x4   :  { %11 = vsyncpa [#allocation8], 0 }
   0x5   :  { %13 = vsyncpa [#allocation8 + $0x1], 0  ;;  %s1497_s12 = smov 0   ;;  %s1499_s13 = smov 0  }
   0x6   :  { %s1501_s14 = smov 0   ;;  %s1503_s15 = smov 0  }
   0x7   :  { %s1505_s16 = smov 0   ;;  %s1507_s17 = smov 0  }
   0x8 LB: > { %s1845_s18 = sadd.s32 4294967295, %s1461_s17   ;;  %s38_s19 = sadd.s32 1, %s1457_s16  ;;  %s1461_s17 = sphi %s1507_s17, %s19_s17   ;;  %s1457_s16 = sphi %s1505_s16, %s1859_s16   ;;  %s1453_s15 = sphi %s1503_s15, %s1858_s15   ;;  %s1449_s14 = sphi %s1501_s14, %s1857_s14   ;;  %s1445_s13 = sphi %s1499_s13, %s1856_s13   ;;  %s1441_s12 = sphi %s1497_s12, %s1855_s12  }
   0x9   : > { %p40_p0 = scmp.ge.s32.totalorder %s38_s19, 2  ;;  %s47_s20 = sadd.s32 1, %s1449_s14 }
   0xa   : > { %p54_p1 = scmp.ne.s32.totalorder %s1449_s14, %s1445_s13  ;;  %p55_p2 = scmp.eq.s32.totalorder %s1461_s17, 0 }
   0xb   : > { %s1861_s19 = smov (%p40_p0, %s38_s19), 0  ;;  %p60_p4 = scmp.ne.s32.totalorder %s1445_s13, %s1441_s12 }
   0xc   : > { %1848 = sst [smem:[#allocation12_spill]] %s1861_s19  ;;  %p56_p3 = por %p55_p2, %p54_p1 }
   0xd   : > { %s42_s21 = ssub.s32 %s1457_s16, %s1861_s19  ;;  %p61_p5 = scmp.eq.s32.totalorder %s1845_s18, 0 }
   0xe   : > { %p45_p6 = scmp.eq.s32.totalorder %s42_s21, 0  ;;  %p1185_p8 = scmp.lt.s32.totalorder %s1461_s17, 2 }
   0xf   : > { %p1538_p7 = por %p61_p5, %p60_p4  ;;  %s168_s24 = sand.u32 1, %s1449_s14  }
  0x10   : > { %s1544_s23 = scalar_select %p45_p6, %s1449_s14, %s47_s20  }
  0x11   : > { %s1548_s25 = sshll.u32 %s1457_s16, 4  ;;  %s1124_s26 = sshll.u32 %s168_s24, 4 }
  0x12   : > { %p1550_p9 = pnand %p1185_p8, %p56_p3  ;;  %s192_s28 = sand.u32 1, %s1461_s17  }
  0x13   : > { %s1851_s1 = sld [smem:[#allocation13_spill]]  ;;  %s196_s5 = scalar_lea.vmem [#allocation7], %s1124_s26 }
  0x14   : > { %s206_s6 = sshll.u32 %s196_s5, 4  ;;  %p1133_p10 = scmp.ge.s32.totalorder %s1461_s17, 1  ;;  %s207_s6 = int_to_ptr.vmem [resolvable:$true] %s206_s6 }
  0x15   : > { %s193_s8 = scalar_lea.sflag [#allocation8], %s192_s28  ;;  %s1463_s9 = smov 128  }
  0x16   : > { %s1464_s10 = smov 8   ;;  %p238_p11 = scmp.lt.s32.totalorder %s1461_s17, 3 }
  0x17   : > { %s179_s21 = scalar_lea.hbm %s1841_s0, %s1548_s25  ;;  %s172_s29 = scalar_lea.vmem [#allocation5], %s1124_s26 }
  0x18   : > { %p1563_p12 = pnand %p1133_p10, %p238_p11  ;;  %s182_s30 = sshll.u32 %s172_s29, 4  ;;  %s183_s30 = int_to_ptr.vmem [resolvable:$true] %s182_s30 }
  0x19   : > { %s203_s4 = scalar_lea.hbm %s1851_s1, %s1548_s25  ;;  %s169_s28 = scalar_lea.sflag [#allocation6], %s168_s24 }
  0x1a   : > { %s204_s7 = sshll.u32 %s203_s4, 4  ;;  %s180_s4 = sshll.u32 %s179_s21, 4  ;;  %s205_s7 = int_to_ptr.hbm [resolvable:$true] %s204_s7  ;;  %s181_s4 = int_to_ptr.hbm [resolvable:$true] %s180_s4 }
  0x1b   : > { %1181 = dma.hbm_to_vmem [thread:$0]  (!%p1550_p9), %s205_s7, 256, %s207_s6, %s193_s8, %s1463_s9, %s1463_s9, %s1464_s10  }
  0x1c   : > { %1178 = dma.hbm_to_vmem [thread:$0]  (!%p1550_p9), %s181_s4, 256, %s183_s30, %s169_s28, %s1463_s9, %s1463_s9, %s1464_s10  }
  0x1d   : > { %s227_s7 = scalar_lea.hbm %s1843_s2, %s1548_s25  ;;  %s220_s18 = scalar_lea.vmem [#allocation9], %s1124_s26 }
  0x1e   : > { %s230_s1 = sshll.u32 %s220_s18, 4  ;;  %s228_s19 = sshll.u32 %s227_s7, 4  ;;  %s231_s1 = int_to_ptr.vmem [resolvable:$true] %s230_s1  ;;  %s229_s19 = int_to_ptr.hbm [resolvable:$true] %s228_s19 }
  0x1f   : > { %1184 = dma.hbm_to_vmem [thread:$0]  (!%p1550_p9), %s229_s19, 256, %s231_s1, %s193_s8, %s1463_s9, %s1463_s9, %s1464_s10  }
  0x20   : > { %242 = sbr.rel (%p1563_p12) target bundleno = 1545 (0x609), region = 32  ;;  %s244_s12 = sand.u32 (!%p1563_p12), 1, %s1445_s13  }
  0x21   : > { %s1582_s24 = sshll.u32 (!%p1563_p12), %s244_s12, 4  ;;  %s245_s20 = scalar_lea.sflag (!%p1563_p12), [#allocation6], %s244_s12 }
  0x22   : > { %s248_s21 = scalar_lea.vmem (!%p1563_p12), [#allocation5], %s1582_s24 }
  0x25   : > { %1432 = dma.done.wait (%p1538_p7), %s245_s20, 256  }
  0x26   : > { %1434 = vsyncadd (%p1538_p7), %s245_s20, 4294967040  ;;  %s1853_s18 = sadd.s32 4294967295, %s1461_s17   ;;  %s258_s25 = scalar_lea.vmem [#allocation7], %s1582_s24 }
  0x27   : > { %s254_s1 = sand.u32 1, %s1853_s18  }
  0x28   : > { %s255_s19 = scalar_lea.sflag [#allocation8], %s254_s1 }
  0x29   : > { %1436 = dma.done.wait (%p1538_p7), %s255_s19, 512  }
  0x2a   : > { %1438 = vsyncadd (%p1538_p7), %s255_s19, 4294966784  ;;  %vm338_vm0 = vcmask 64512   ;;  %v333_v0 = vld [vmem:[%s258_s25 + $0x8] sm:$0xff]  ;;  %v330_v1 = vld [vmem:[%s248_s21] sm:$0xff]  ;;  %s1465_s26 = smov 120   ;;  %vm378_vm1 = vcmask 130048  }
  0x2b   : > { %1139 = vmatpush.xpose.msk.msra.mxu0 %vm338_vm0, %v333_v0  ;;  %v332_v2 = vld [vmem:[%s258_s25] sm:$0xff]  ;;  %v336_v3 = vmul.f32 0.35355338, %v330_v1  ;;  %v331_v4 = vld [vmem:[%s248_s21 + $0x8] sm:$0xff]  ;;  %vm323_vm2 = vcmask 261120   ;;  %v1466_v8 = vmov -inf  }
  0x2c   : > { %v337_v5 = vmul.f32 0.35355338, %v331_v4  ;;  %324 = vst.msk [vmem:[#allocation3] sm:$0xff] %vm323_vm2, %v1466_v8  ;;  %s1467_s22 = smov 112   ;;  %s1468_s27 = smov 104   ;;  %v1469_v11 = vmov 0  }
  0x2d   : > { %480 = vrot.lane.b32.xlu2 %v336_v3, %s1465_s26  ;;  %325 = vst.msk [vmem:[#allocation3 + $0x8] sm:$0xff] %vm323_vm2, %v1466_v8  ;;  %v1470_v12 = vmov 0.0   ;;  %s268_s8 = scalar_lea.vmem [#allocation9], %s1582_s24  ;;  %v1471_v51 = vmov 8   ;;  %vm624_vm3 = vcmask 130112   ;;  %vm783_vm4 = vcmask 195712  }
  0x2e   : > { %1248 = vset.pattern.permute.xlu2 %v1469_v11  ;;  %327 = vst.msk [vmem:[#allocation4 + $0x8] sm:$0xff] %vm323_vm2, %v1470_v12  ;;  %v335_v23 = vld [vmem:[%s268_s8 + $0x8] sm:$0xff]  ;;  %v334_v24 = vld [vmem:[%s268_s8] sm:$0xff]  ;;  %1250 = vset.pattern.permute.xlu1 %v1471_v51  ;;  %s1474_s9 = smov 8   ;;  %vm942_vm5 = vcmask 261312   ;;  %s1475_s10 = smov 16  }
  0x2f   : > { %1140 = vmatpush.xpose.msk.msra.mxu0 %vm338_vm0, %v332_v2  ;;  %326 = vst.msk [vmem:[#allocation4] sm:$0xff] %vm323_vm2, %v1470_v12  ;;  %439 = vmatpush.msra.mxu1 %v335_v23  ;;  %v1251_v56 = vpack.i.bf16 %v334_v24, %v335_v23  ;;  %s1476_s11 = smov 24   ;;  %p310_p13 = scmp.lt.s32.totalorder %s1453_s15, 1 }
  0x30   : > { %328 = vst.msk [vmem:[#allocation2] sm:$0xff] %vm323_vm2, %v1470_v12 }
  0x31   : > { %329 = vst.msk [vmem:[#allocation2 + $0x8] sm:$0xff] %vm323_vm2, %v1470_v12  ;;  %440 = vmatpush.msra.mxu1 %v334_v24  ;;  %v1473_v24 = vmov 24   ;;  %s1863_s15 = smov (!%p310_p13, %s1453_s15), 1 }
  0x32   : > { %1141 = vmatmul.msk.f32.vlgmr.msra.gmra.mxu0 %vm338_vm0, %v336_v3  ;;  %s1168_s29 = sshll.u32 %s1863_s15, 4 }
  0x33   : > { %v1618_v13 = vld [vmem:[#allocation3] sm:$0xff]  ;;  %s317_s28 = scalar_lea.vmem %s1844_s3, %s1168_s29 }
  0x34   : > { %v1624_v16 = vld [vmem:[#allocation3 + $0x8] sm:$0xff] }
  0x35   : > { %482 = vrot.lane.b32.xlu2 %v337_v5, %s1465_s26 }
  0x3a   : > { %1142 = vmatmul.msk.f32.gmra.mxu0 %vm338_vm0, %v337_v5 }
  0x87   : > { %v481_v20 = vpop.permute.xlu2 %480 }
  0x8f   : > { %v483_v22 = vpop.permute.xlu2 %482 }
  0xaf   : > { %v368_v6 = vpop.f32.mrf.mxu0 }
  0xb0   : > { %v379_v7 = vsel %vm378_vm1, %v368_v6, -inf }
  0xb1   : > { %380 = vmax.xlane.f32.xlu0 %v379_v7 }
  0xb7   : > { %v371_v9 = vpop.f32.mrf.mxu0 }
  0xb8   : > { %v382_v10 = vsel %vm378_vm1, %v371_v9, -inf }
  0xb9   : > { %383 = vmax.xlane.f32.xlu1 %v382_v10 }
  0xc5   : > { %486 = vrot.lane.b32.xlu0 %v333_v0, %s1465_s26 }
  0xcd   : > { %647 = vrot.lane.b32.xlu0 %v333_v0, %s1467_s22 }
  0xd2   : > { %484 = vrot.lane.b32.xlu1 %v332_v2, %s1465_s26 }
  0xd5   : > { %643 = vrot.lane.b32.xlu0 %v337_v5, %s1467_s22 }
  0xda   : > { %641 = vrot.lane.b32.xlu1 %v336_v3, %s1467_s22 }
  0xdd   : > { %800 = vrot.lane.b32.xlu0 %v336_v3, %s1468_s27  ;;  %v1472_v3 = vmov 16  }
  0xde   : > { %1256 = vset.pattern.permute.xlu0 %v1472_v3 }
  0xe2   : > { %804 = vrot.lane.b32.xlu1 %v332_v2, %s1468_s27 }
 0x124   : > { %v381_v14 = vpop.xlane.xlu0 %380 }
 0x125   : > { %v1621_v15 = vmax.f32 %v1618_v13, %v381_v14 }
 0x127   : > { %395 = vperm.xlu2 %1248, %v1621_v15  }
 0x12c   : > { %v384_v17 = vpop.xlane.xlu1 %383 }
 0x12d   : > { %v1627_v18 = vmax.f32 %v1624_v16, %v384_v17 }
 0x12f   : > { %400 = vperm.xlu2 %1248, %v1627_v18  }
 0x137   : > { %645 = vrot.lane.b32.xlu2 %v332_v2, %s1467_s22  ;;  %v487_v19 = vpop.permute.xlu0 %486 }
 0x138   : > { %1145 = vmatpush.xpose.msk.msra.mxu2 %vm338_vm0, %v487_v19  ;;  %1249 = vset.pattern.permute.xlu2 %v1471_v51 }
 0x13f   : > { %806 = vrot.lane.b32.xlu2 %v333_v0, %s1468_s27  ;;  %v648_v25 = vpop.permute.xlu0 %647 }
 0x140   : > { %1151 = vmatpush.xpose.msk.msrb.mxu1 %vm338_vm0, %v648_v25 }
 0x144   : > { %v485_v21 = vpop.permute.xlu1 %484 }
 0x145   : > { %1146 = vmatpush.xpose.msk.msra.mxu2 %vm338_vm0, %v485_v21 }
 0x147   : > { %802 = vrot.lane.b32.xlu2 %v337_v5, %s1468_s27  ;;  %v644_v36 = vpop.permute.xlu0 %643 }
 0x148   : > { %1147 = vmatmul.msk.f32.vlgmr.msra.gmra.mxu2 %vm338_vm0, %v481_v20 }
 0x14c   : > { %v642_v34 = vpop.permute.xlu1 %641 }
 0x14f   : > { %v801_v39 = vpop.permute.xlu0 %800 }
 0x150   : > { %1148 = vmatmul.msk.f32.gmra.mxu2 %vm338_vm0, %v483_v22 }
 0x154   : > { %v805_v38 = vpop.permute.xlu1 %804 }
 0x181   : > { %v396_v26 = vpop.permute.xlu2 %395 }
 0x182   : > { %v403_v27 = vsub.f32 %v368_v6, %v396_v26  ;;  %466 = vst.msk [vmem:[#allocation3] sm:$0xff] %vm338_vm0, %v396_v26 }
 0x184   : > { %v405_v28 = vmul.f32 1.442695, %v403_v27 }
 0x186   : > { %1281 = vpow2.f32 %v405_v28 }
 0x189   : > { %v401_v29 = vpop.permute.xlu2 %400  ;;  %v1674_v54 = vld [vmem:[#allocation3] sm:$0xff] }
 0x18a   : > { %v404_v30 = vsub.f32 %v371_v9, %v401_v29  ;;  %467 = vst.msk [vmem:[#allocation3 + $0x8] sm:$0xff] %vm338_vm0, %v401_v29 }
 0x18c   : > { %v1641_v31 = vpop.eup %1281  ;;  %v407_v32 = vmul.f32 1.442695, %v404_v30 }
 0x18d   : > { %1143 = vmatmul.msk.f32.vlgmr.msra.gmra.mxu1 %vm378_vm1, %v1641_v31  ;;  %v411_v25 = vsel %vm378_vm1, %v1641_v31, 0.0  ;;  %v388_v31 = vsub.f32 %v1624_v16, %v1627_v18 }
 0x18e   : > { %1283 = vpow2.f32 %v407_v32 }
 0x18f   : > { %v391_v32 = vmul.f32 1.442695, %v388_v31 }
 0x191   : > { %v646_v33 = vpop.permute.xlu2 %645  ;;  %v1680_v58 = vld [vmem:[#allocation3 + $0x8] sm:$0xff] }
 0x192   : > { %1152 = vmatpush.xpose.msk.msrb.mxu1 %vm338_vm0, %v646_v33 }
 0x194   : > { %v1646_v35 = vpop.eup %1283 }
 0x195   : > { %1144 = vmatmul.msk.f32.gmra.mxu1 %vm378_vm1, %v1646_v35  ;;  %v414_v23 = vsel %vm378_vm1, %v1646_v35, 0.0 }
 0x199   : > { %v807_v37 = vpop.permute.xlu2 %806 }
 0x19a   : > { %1157 = vmatpush.xpose.msk.msrb.mxu0 %vm338_vm0, %v807_v37 }
 0x19d   : > { %1153 = vmatmul.msk.f32.vlgmr.msrb.gmra.mxu1 %vm338_vm0, %v642_v34 }
 0x19e   : > { %1158 = vmatpush.xpose.msk.msrb.mxu0 %vm338_vm0, %v805_v38 }
 0x1a1   : > { %1159 = vmatmul.msk.f32.vlgmr.msrb.gmra.mxu0 %vm338_vm0, %v801_v39  ;;  %v803_v44 = vpop.permute.xlu2 %802 }
 0x1a5   : > { %1154 = vmatmul.msk.f32.gmra.mxu1 %vm338_vm0, %v644_v36 }
 0x1a9   : > { %1160 = vmatmul.msk.f32.gmra.mxu0 %vm338_vm0, %v803_v44 }
 0x1cb   : > { %v513_v40 = vpop.f32.mrf.mxu2 }
 0x1cc   : > { %v523_v41 = vsel %vm378_vm1, %v513_v40, -inf }
 0x1cd   : > { %524 = vmax.xlane.f32.xlu1 %v523_v41 }
 0x1d3   : > { %v516_v42 = vpop.f32.mrf.mxu2 }
 0x1d4   : > { %v526_v43 = vsel %vm378_vm1, %v516_v42, -inf }
 0x1d5   : > { %527 = vmax.xlane.f32.xlu0 %v526_v43 }
 0x20a   : > { %v1658_v45 = vpop.f32.mrf.mxu1 }
 0x212   : > { %v1660_v46 = vpop.f32.mrf.mxu1 }
 0x21a   : > { %v1662_v47 = vpop.f32.mrf.mxu1 }
 0x21b   : > { %v684_v60 = vsel %vm378_vm1, %v1662_v47, -inf }
 0x21e   : > { %v1664_v48 = vpop.f32.mrf.mxu0 }
 0x21f   : > { %v843_v49 = vsel %vm378_vm1, %v1664_v48, -inf }
 0x220   : > { %844 = vmax.xlane.f32.xlu2 %v843_v49 }
 0x222   : > { %v1668_v50 = vpop.f32.mrf.mxu1 }
 0x223   : > { %v687_v52 = vsel %vm378_vm1, %v1668_v50, -inf }
 0x224   : > { %688 = vmax.xlane.f32.xlu0 %v687_v52 }
 0x226   : > { %v1689_v61 = vpop.f32.mrf.mxu0 }
 0x227   : > { %v846_v62 = vsel %vm378_vm1, %v1689_v61, -inf }
 0x240   : > { %v525_v53 = vpop.xlane.xlu1 %524 }
 0x241   : > { %v1677_v55 = vmax.f32 %v1674_v54, %v525_v53 }
 0x243   : > { %539 = vperm.xlu2 %1249, %v1677_v55  }
 0x248   : > { %v528_v57 = vpop.xlane.xlu0 %527 }
 0x249   : > { %v1683_v59 = vmax.f32 %v1680_v58, %v528_v57  ;;  %v376_v57 = vld [vmem:[#allocation4] sm:$0xff] }
 0x24b   : > { %544 = vperm.xlu1 %1250, %v1683_v59   ;;  %1252 = vrot.lane.b32.xlu2 %v1251_v56, %s1465_s26 }
 0x24c   : > { %1257 = vset.pattern.permute.xlu2 %v1472_v3 }
 0x253   : > { %1263 = vset.pattern.permute.xlu1 %v1473_v24 }
 0x274   : > { %685 = vmax.xlane.f32.xlu2 %v684_v60 }
 0x275   : > { %847 = vmax.xlane.f32.xlu1 %v846_v62 }
 0x28e   : > { %1259 = vrot.lane.b32.xlu1 %v1251_v56, %s1467_s22 }
 0x293   : > { %v1693_v63 = vpop.xlane.xlu2 %844 }
 0x297   : > { %v689_v12 = vpop.xlane.xlu0 %688 }
 0x29d   : > { %v540_v0 = vpop.permute.xlu2 %539 }
 0x29e   : > { %v547_v1 = vsub.f32 %v513_v40, %v540_v0  ;;  %627 = vst.msk [vmem:[#allocation3] sm:$0xff] %vm624_vm3, %v540_v0  ;;  %v377_v0 = vld [vmem:[#allocation4 + $0x8] sm:$0xff] }
 0x2a0   : > { %v549_v2 = vmul.f32 1.442695, %v547_v1 }
 0x2a2   : > { %1285 = vpow2.f32 %v549_v2 }
 0x2a5   : > { %v1253_v4 = vpop.permute.xlu2 %1252  ;;  %v680_v20 = vld [vmem:[#allocation3] sm:$0xff] }
 0x2a6   : > { %v1254_v5 = vunpack.i.l.bf16 %v1253_v4  ;;  %v1255_v6 = vunpack.i.h.bf16 %v1253_v4 }
 0x2a8   : > { %591 = vmatpush.msra.mxu3 %v1254_v5  ;;  %v1698_v7 = vpop.eup %1285 }
 0x2aa   : > { %592 = vmatpush.msra.mxu3 %v1255_v6  ;;  %v449_v6 = vld [vmem:[#allocation2 + $0x8] sm:$0xff] }
 0x2ab   : > { %1149 = vmatmul.msk.f32.vlgmr.msra.gmra.mxu3 %vm378_vm1, %v1698_v7 }
 0x2bd   : > { %v545_v8 = vpop.permute.xlu1 %544 }
 0x2be   : > { %v548_v9 = vsub.f32 %v516_v42, %v545_v8  ;;  %628 = vst.msk [vmem:[#allocation3 + $0x8] sm:$0xff] %vm624_vm3, %v545_v8 }
 0x2c0   : > { %v551_v10 = vmul.f32 1.442695, %v548_v9 }
 0x2c2   : > { %1287 = vpow2.f32 %v551_v10 }
 0x2c3   : > { %1289 = vpow2.f32 %v391_v32 }
 0x2c5   : > { %v1703_v14 = vld [vmem:[#allocation3 + $0x8] sm:$0xff] }
 0x2c6   : > { %v1706_v17 = vmax.f32 %v1703_v14, %v689_v12  ;;  %v555_v12 = vsel %vm378_vm1, %v1698_v7, 0.0 }
 0x2c8   : > { %v1288_v19 = vpop.eup %1287  ;;  %705 = vperm.xlu2 %1257, %v1706_v17  }
 0x2c9   : > { %1150 = vmatmul.msk.f32.gmra.mxu3 %vm378_vm1, %v1288_v19  ;;  %v558_v30 = vsel %vm378_vm1, %v1288_v19, 0.0  ;;  %v1290_v36 = vpop.eup %1289 }
 0x2ca   : > { %v410_v2 = vmul.f32 %v1290_v36, %v377_v0 }
 0x2d0   : > { %1273 = vset.pattern.permute.xlu2 %v1469_v11 }
 0x2e7   : > { %v686_v21 = vpop.xlane.xlu2 %685 }
 0x2e8   : > { %v690_v22 = vmax.f32 %v680_v20, %v686_v21  ;;  %v848_v27 = vpop.xlane.xlu1 %847  ;;  %v531_v21 = vsub.f32 %v1674_v54, %v1677_v55 }
 0x2ea   : > { %700 = vperm.xlu0 %1256, %v690_v22   ;;  %v692_v37 = vsub.f32 %v680_v20, %v690_v22  ;;  %v533_v22 = vmul.f32 1.442695, %v531_v21 }
 0x2ec   : > { %v694_v38 = vmul.f32 1.442695, %v692_v37 }
 0x2ee   : > { %1291 = vpow2.f32 %v694_v38 }
 0x2f1   : > { %415 = vadd.xlane.f32.xlu2 %v414_v23  ;;  %v693_v23 = vsub.f32 %v1703_v14, %v1706_v17 }
 0x2f2   : > { %1264 = vset.pattern.permute.xlu0 %v1473_v24 }
 0x2f4   : > { %v1732_v40 = vpop.eup %1291 }
 0x300   : > { %v1260_v33 = vpop.permute.xlu1 %1259 }
 0x301   : > { %v1261_v34 = vunpack.i.l.bf16 %v1260_v33  ;;  %v1262_v35 = vunpack.i.h.bf16 %v1260_v33 }
 0x303   : > { %750 = vmatpush.msrb.mxu3 %v1261_v34 }
 0x305   : > { %751 = vmatpush.msrb.mxu3 %v1262_v35 }
 0x309   : > { %1266 = vrot.lane.b32.xlu2 %v1251_v56, %s1468_s27 }
 0x314   : > { %412 = vadd.xlane.f32.xlu0 %v411_v25  ;;  %v696_v25 = vmul.f32 1.442695, %v693_v23 }
 0x322   : > { %v706_v26 = vpop.permute.xlu2 %705 }
 0x323   : > { %787 = vst.msk [vmem:[#allocation3 + $0x8] sm:$0xff] %vm783_vm4, %v706_v26  ;;  %v709_v42 = vsub.f32 %v1668_v50, %v706_v26  ;;  %v387_v50 = vsub.f32 %v1618_v13, %v1621_v15 }
 0x325   : > { %v712_v44 = vmul.f32 1.442695, %v709_v42  ;;  %v389_v53 = vmul.f32 1.442695, %v387_v50 }
 0x32a   : > { %v1720_v28 = vld [vmem:[#allocation3 + $0x8] sm:$0xff] }
 0x32b   : > { %v1723_v29 = vmax.f32 %v1720_v28, %v848_v27 }
 0x32d   : > { %864 = vperm.xlu0 %1264, %v1723_v29  }
 0x32e   : > { %v594_v39 = vpop.f32.mrf.mxu3 }
 0x332   : > { %559 = vadd.xlane.f32.xlu2 %v558_v30 }
 0x335   : > { %1271 = vset.pattern.permute.xlu0 %v1471_v51 }
 0x34a   : > { %457 = vperm.xlu2 %1273, %v1290_v36  }
 0x352   : > { %616 = vrot.lane.b32.xlu2 %v594_v39, %s1474_s9 }
 0x353   : > { %1276 = vset.pattern.permute.xlu2 %v1472_v3 }
 0x35a   : > { %763 = vperm.xlu2 %1276, %v1732_v40  }
 0x35c   : > { %v701_v16 = vpop.permute.xlu0 %700 }
 0x35d   : > { %v708_v18 = vsub.f32 %v1662_v47, %v701_v16  ;;  %786 = vst.msk [vmem:[#allocation3] sm:$0xff] %vm783_vm4, %v701_v16 }
 0x35f   : > { %v710_v41 = vmul.f32 1.442695, %v708_v18 }
 0x361   : > { %1293 = vpow2.f32 %v710_v41 }
 0x362   : > { %1295 = vpow2.f32 %v712_v44 }
 0x363   : > { %1297 = vpow2.f32 %v389_v53 }
 0x364   : > { %v1738_v43 = vld [vmem:[#allocation3] sm:$0xff]  ;;  %v416_v1 = vpop.xlane.xlu2 %415  ;;  %1299 = vpow2.f32 %v533_v22 }
 0x365   : > { %v1742_v49 = vmax.f32 %v1738_v43, %v1693_v63  ;;  %v418_v4 = vadd.f32 %v416_v1, %v410_v2  ;;  %1301 = vpow2.f32 %v696_v25 }
 0x367   : > { %v1744_v52 = vpop.eup %1293  ;;  %859 = vperm.xlu1 %1263, %v1742_v49   ;;  %v851_v22 = vsub.f32 %v1738_v43, %v1742_v49 }
 0x368   : > { %1155 = vmatmul.msk.f32.vlgmr.msrb.gmra.mxu3 %vm378_vm1, %v1744_v52  ;;  %v1296_v47 = vpop.eup %1295  ;;  %v716_v18 = vsel %vm378_vm1, %v1744_v52, 0.0 }
 0x369   : > { %v1753_v56 = vpop.eup %1297  ;;  %v853_v23 = vmul.f32 1.442695, %v851_v22 }
 0x36a   : > { %v409_v60 = vmul.f32 %v1753_v56, %v376_v57 }
 0x36c   : > { %v1267_v5 = vpop.permute.xlu2 %1266 }
 0x36d   : > { %v1268_v19 = vunpack.i.l.bf16 %v1267_v5  ;;  %v1269_v20 = vunpack.i.h.bf16 %v1267_v5 }
 0x36f   : > { %1270 = vset.pattern.permute.xlu1 %v1469_v11  ;;  %909 = vmatpush.msrb.mxu2 %v1268_v19 }
 0x370   : > { %1156 = vmatmul.msk.f32.gmra.mxu3 %vm378_vm1, %v1296_v47 }
 0x371   : > { %910 = vmatpush.msrb.mxu2 %v1269_v20 }
 0x387   : > { %v413_v62 = vpop.xlane.xlu0 %412 }
 0x388   : > { %v417_v63 = vadd.f32 %v413_v62, %v409_v60 }
 0x38a   : > { %470 = vperm.xlu1 %1270, %v417_v63   ;;  %v448_v63 = vld [vmem:[#allocation2] sm:$0xff] }
 0x392   : > { %475 = vperm.xlu1 %1270, %v418_v4  }
 0x39a   : > { %1274 = vset.pattern.permute.xlu1 %v1471_v51 }
 0x39f   : > { %v865_v13 = vpop.permute.xlu0 %864 }
 0x3a0   : > { %946 = vst.msk [vmem:[#allocation3 + $0x8] sm:$0xff] %vm942_vm5, %v865_v13  ;;  %v868_v54 = vsub.f32 %v1689_v61, %v865_v13  ;;  %v719_v61 = vsel %vm378_vm1, %v1296_v47, 0.0 }
 0x3a2   : > { %v871_v55 = vmul.f32 1.442695, %v868_v54 }
 0x3a5   : > { %v560_v15 = vpop.xlane.xlu2 %559 }
 0x3ad   : > { %v458_v8 = vpop.permute.xlu2 %457 }
 0x3ae   : > { %v461_v9 = vmul.f32 %v458_v8, %v449_v6 }
 0x3b0   : > { %v463_v10 = vadd.f32 %v461_v9, %v1660_v46  ;;  %v1300_v46 = vpop.eup %1299 }
 0x3b1   : > { %v1302_v30 = vpop.eup %1301 }
 0x3b2   : > { %465 = vst.msk [vmem:[#allocation2 + $0x8] sm:$0xff] %vm338_vm0, %v463_v10 }
 0x3b9   : > { %v601_v6 = vld [vmem:[#allocation2 + $0x8] sm:$0xff] }
 0x3bc   : > { %556 = vadd.xlane.f32.xlu1 %v555_v12 }
 0x3d5   : > { %604 = vperm.xlu1 %1274, %v1300_v46  }
 0x3d9   : > { %v860_v26 = vpop.permute.xlu1 %859 }
 0x3da   : > { %v867_v7 = vsub.f32 %v1664_v48, %v860_v26  ;;  %945 = vst.msk [vmem:[#allocation3] sm:$0xff] %vm942_vm5, %v860_v26 }
 0x3dc   : > { %v869_v27 = vmul.f32 1.442695, %v867_v7 }
 0x3dd   : > { %1277 = vset.pattern.permute.xlu1 %v1472_v3  ;;  %v532_v3 = vsub.f32 %v1680_v58, %v1683_v59  ;;  %v597_v58 = vpop.f32.mrf.mxu3 }
 0x3de   : > { %1303 = vpow2.f32 %v869_v27  ;;  %768 = vperm.xlu1 %1277, %v1302_v30  }
 0x3df   : > { %1305 = vpow2.f32 %v871_v55  ;;  %v535_v32 = vmul.f32 1.442695, %v532_v3 }
 0x3e1   : > { %1307 = vpow2.f32 %v535_v32 }
 0x3e2   : > { %1309 = vpow2.f32 %v853_v23 }
 0x3e4   : > { %v1770_v31 = vpop.eup %1303 }
 0x3e5   : > { %1161 = vmatmul.msk.f32.vlgmr.msrb.gmra.mxu2 %vm378_vm1, %v1770_v31  ;;  %v1306_v14 = vpop.eup %1305  ;;  %v875_v12 = vsel %vm378_vm1, %v1770_v31, 0.0 }
 0x3e6   : > { %v878_v62 = vsel %vm378_vm1, %v1306_v14, 0.0 }
 0x3e7   : > { %v1308_v38 = vpop.eup %1307 }
 0x3eb   : > { %v753_v59 = vpop.f32.mrf.mxu3 }
 0x3ed   : > { %1162 = vmatmul.msk.f32.gmra.mxu2 %vm378_vm1, %v1306_v14 }
 0x3f3   : > { %v756_v25 = vpop.f32.mrf.mxu3 }
 0x3fc   : > { %v471_v48 = vpop.permute.xlu1 %470 }
 0x3fd   : > { %478 = vst.msk [vmem:[#allocation4] sm:$0xff] %vm338_vm0, %v471_v48 }
 0x404   : > { %v476_v17 = vpop.permute.xlu1 %475  ;;  %v521_v33 = vld [vmem:[#allocation4] sm:$0xff] }
 0x405   : > { %479 = vst.msk [vmem:[#allocation4 + $0x8] sm:$0xff] %vm338_vm0, %v476_v17  ;;  %v553_v34 = vmul.f32 %v1300_v46, %v521_v33  ;;  %v1310_v46 = vpop.eup %1309 }
 0x408   : > { %720 = vadd.xlane.f32.xlu1 %v719_v61 }
 0x40c   : > { %v522_v37 = vld [vmem:[#allocation4 + $0x8] sm:$0xff] }
 0x40d   : > { %v554_v39 = vmul.f32 %v1308_v38, %v522_v37 }
 0x40f   : > { %v562_v16 = vadd.f32 %v560_v15, %v554_v39  ;;  %v617_v15 = vpop.permute.xlu2 %616 }
 0x42f   : > { %v557_v35 = vpop.xlane.xlu1 %556 }
 0x430   : > { %v561_v36 = vadd.f32 %v557_v35, %v553_v34 }
 0x432   : > { %631 = vperm.xlu0 %1271, %v561_v36  }
 0x43a   : > { %636 = vperm.xlu0 %1271, %v562_v16  }
 0x442   : > { %1272 = vset.pattern.permute.xlu0 %v1469_v11 }
 0x447   : > { %v605_v41 = vpop.permute.xlu1 %604 }
 0x450   : > { %v1790_v44 = vpop.permute.xlu1 %768 }
 0x464   : > { %717 = vadd.xlane.f32.xlu0 %v716_v18 }
 0x468   : > { %v912_v26 = vpop.f32.mrf.mxu2 }
 0x478   : > { %452 = vperm.xlu0 %1272, %v1753_v56  }
 0x47b   : > { %v721_v47 = vpop.xlane.xlu1 %720 }
 0x480   : > { %1275 = vset.pattern.permute.xlu0 %v1471_v51 }
 0x481   : > { %609 = vperm.xlu0 %1275, %v1308_v38  }
 0x489   : > { %618 = vrot.lane.b32.xlu0 %v597_v58, %s1474_s9 }
 0x48a   : > { %1279 = vset.pattern.permute.xlu0 %v1473_v24 }
 0x491   : > { %775 = vrot.lane.b32.xlu0 %v753_v59, %s1475_s10 }
 0x4a4   : > { %v632_v11 = vpop.permute.xlu0 %631 }
 0x4a5   : > { %639 = vst.msk [vmem:[#allocation4] sm:$0xff] %vm624_vm3, %v632_v11 }
 0x4ac   : > { %v637_v42 = vpop.permute.xlu0 %636  ;;  %v682_v53 = vld [vmem:[#allocation4] sm:$0xff] }
 0x4ad   : > { %640 = vst.msk [vmem:[#allocation4 + $0x8] sm:$0xff] %vm624_vm3, %v637_v42  ;;  %v714_v56 = vmul.f32 %v1732_v40, %v682_v53 }
 0x4b4   : > { %v683_v51 = vld [vmem:[#allocation4 + $0x8] sm:$0xff] }
 0x4b5   : > { %v715_v52 = vmul.f32 %v1302_v30, %v683_v51  ;;  %v852_v30 = vsub.f32 %v1720_v28, %v1723_v29  ;;  %v915_v29 = vpop.f32.mrf.mxu2 }
 0x4b7   : > { %v723_v50 = vadd.f32 %v721_v47, %v715_v52  ;;  %v855_v43 = vmul.f32 1.442695, %v852_v30 }
 0x4b9   : > { %795 = vperm.xlu1 %1277, %v723_v50   ;;  %1311 = vpow2.f32 %v855_v43 }
 0x4bf   : > { %v1312_v54 = vpop.eup %1311 }
 0x4c1   : > { %1278 = vset.pattern.permute.xlu1 %v1473_v24 }
 0x4d7   : > { %v718_v57 = vpop.xlane.xlu0 %717 }
 0x4d8   : > { %v722_v60 = vadd.f32 %v718_v57, %v714_v56 }
 0x4da   : > { %790 = vperm.xlu2 %1276, %v722_v60  }
 0x4e2   : > { %1280 = vset.pattern.permute.xlu2 %v1473_v24  ;;  %v764_v24 = vpop.permute.xlu2 %763 }
 0x4e3   : > { %879 = vadd.xlane.f32.xlu1 %v878_v62 }
 0x4ea   : > { %v453_v0 = vpop.permute.xlu0 %452 }
 0x4eb   : > { %v460_v1 = vmul.f32 %v453_v0, %v448_v63 }
 0x4ed   : > { %v462_v2 = vadd.f32 %v460_v1, %v1658_v45 }
 0x4ef   : > { %464 = vst.msk [vmem:[#allocation2] sm:$0xff] %vm338_vm0, %v462_v2 }
 0x4f3   : > { %v610_v4 = vpop.permute.xlu0 %609 }
 0x4f4   : > { %v613_v8 = vmul.f32 %v610_v4, %v601_v6 }
 0x4f6   : > { %v600_v5 = vld [vmem:[#allocation2] sm:$0xff] }
 0x4f7   : > { %v612_v13 = vmul.f32 %v605_v41, %v600_v5 }
 0x4f9   : > { %v622_v40 = vadd.f32 %v617_v15, %v612_v13 }
 0x4fb   : > { %625 = vst.msk [vmem:[#allocation2] sm:$0xff] %vm624_vm3, %v622_v40  ;;  %v619_v9 = vpop.permute.xlu0 %618 }
 0x4fc   : > { %v623_v10 = vadd.f32 %v619_v9, %v613_v8 }
 0x4fe   : > { %626 = vst.msk [vmem:[#allocation2 + $0x8] sm:$0xff] %vm624_vm3, %v623_v10 }
 0x502   : > { %v759_v45 = vld [vmem:[#allocation2] sm:$0xff] }
 0x503   : > { %876 = vadd.xlane.f32.xlu2 %v875_v12  ;;  %v776_v19 = vpop.permute.xlu0 %775  ;;  %v771_v20 = vmul.f32 %v764_v24, %v759_v45 }
 0x505   : > { %v781_v21 = vadd.f32 %v776_v19, %v771_v20  ;;  %v760_v32 = vld [vmem:[#allocation2 + $0x8] sm:$0xff] }
 0x506   : > { %v772_v33 = vmul.f32 %v1790_v44, %v760_v32 }
 0x507   : > { %784 = vst.msk [vmem:[#allocation2] sm:$0xff] %vm783_vm4, %v781_v21 }
 0x50e   : > { %v918_v36 = vld [vmem:[#allocation2] sm:$0xff] }
 0x51b   : > { %777 = vrot.lane.b32.xlu2 %v756_v25, %s1475_s10 }
 0x523   : > { %922 = vperm.xlu2 %1280, %v1310_v46  }
 0x52b   : > { %934 = vrot.lane.b32.xlu2 %v912_v26, %s1476_s11  ;;  %v796_v7 = vpop.permute.xlu1 %795 }
 0x52c   : > { %799 = vst.msk [vmem:[#allocation4 + $0x8] sm:$0xff] %vm783_vm4, %v796_v7 }
 0x533   : > { %v842_v49 = vld [vmem:[#allocation4 + $0x8] sm:$0xff] }
 0x534   : > { %v791_v27 = vpop.permute.xlu2 %790  ;;  %v874_v55 = vmul.f32 %v1312_v54, %v842_v49 }
 0x535   : > { %798 = vst.msk [vmem:[#allocation4] sm:$0xff] %vm783_vm4, %v791_v27 }
 0x53c   : > { %v841_v48 = vld [vmem:[#allocation4] sm:$0xff] }
 0x53d   : > { %v873_v17 = vmul.f32 %v1310_v46, %v841_v48 }
 0x556   : > { %v880_v31 = vpop.xlane.xlu1 %879 }
 0x557   : > { %v882_v14 = vadd.f32 %v880_v31, %v874_v55 }
 0x559   : > { %954 = vperm.xlu0 %1279, %v882_v14  }
 0x576   : > { %v877_v61 = vpop.xlane.xlu2 %876 }
 0x577   : > { %v881_v3 = vadd.f32 %v877_v61, %v873_v17 }
 0x579   : > { %949 = vperm.xlu1 %1278, %v881_v3  }
 0x57e   : > { %v778_v34 = vpop.permute.xlu2 %777 }
 0x57f   : > { %v782_v35 = vadd.f32 %v778_v34, %v772_v33 }
 0x581   : > { %785 = vst.msk [vmem:[#allocation2 + $0x8] sm:$0xff] %vm783_vm4, %v782_v35  ;;  %927 = vperm.xlu1 %1278, %v1312_v54  }
 0x586   : > { %v923_v28 = vpop.permute.xlu2 %922 }
 0x587   : > { %v930_v37 = vmul.f32 %v923_v28, %v918_v36 }
 0x588   : > { %v919_v41 = vld [vmem:[#allocation2 + $0x8] sm:$0xff] }
 0x589   : > { %936 = vrot.lane.b32.xlu1 %v915_v29, %s1476_s11 }
 0x58e   : > { %v935_v38 = vpop.permute.xlu2 %934 }
 0x58f   : > { %v940_v39 = vadd.f32 %v935_v38, %v930_v37 }
 0x591   : > { %943 = vst.msk [vmem:[#allocation2] sm:$0xff] %vm942_vm5, %v940_v39 }
 0x598   : > { %v966_v42 = vld [vmem:[#allocation2] sm:$0xff] }
 0x5cb   : > { %v955_v16 = vpop.permute.xlu0 %954 }
 0x5cc   : > { %958 = vst.msk [vmem:[#allocation4 + $0x8] sm:$0xff] %vm942_vm5, %v955_v16 }
 0x5d3   : > { %v963_v47 = vld [vmem:[#allocation4 + $0x8] sm:$0xff] }
 0x5eb   : > { %v950_v18 = vpop.permute.xlu1 %949 }
 0x5ec   : > { %957 = vst.msk [vmem:[#allocation4] sm:$0xff] %vm942_vm5, %v950_v18 }
 0x5f3   : > { %v962_v58 = vld [vmem:[#allocation4] sm:$0xff]  ;;  %v928_v59 = vpop.permute.xlu1 %927 }
 0x5f4   : > { %1313 = vrcp.f32 %v962_v58  ;;  %v931_v44 = vmul.f32 %v928_v59, %v919_v41 }
 0x5f5   : > { %1315 = vrcp.f32 %v963_v47 }
 0x5fa   : > { %v1314_v11 = vpop.eup %1313 }
 0x5fb   : > { %v968_v51 = vmul.f32 %v1314_v11, %v966_v42  ;;  %v937_v52 = vpop.permute.xlu1 %936  ;;  %v1316_v53 = vpop.eup %1315 }
 0x5fc   : > { %v941_v50 = vadd.f32 %v937_v52, %v931_v44 }
 0x5fd   : > { %971 = vst.msk [vmem:[%s317_s28] sm:$0xff] %vm323_vm2, %v968_v51 }
 0x5fe   : > { %944 = vst.msk [vmem:[#allocation2 + $0x8] sm:$0xff] %vm942_vm5, %v941_v50 }
 0x605   : > { %v967_v56 = vld [vmem:[#allocation2 + $0x8] sm:$0xff] }
 0x606   : > { %v969_v57 = vmul.f32 %v1316_v53, %v967_v56 }
 0x608   : > { %972 = vst.msk [vmem:[%s317_s28 + $0x8] sm:$0xff] %vm323_vm2, %v969_v57 }
 0x609 PF: > { %s19_s17 = sadd.s32 1, %s1461_s17   ;;  %s1854_s5 = sld [smem:[#allocation12_spill]] }
 0x60a   : > { %p16_p0 = scmp.ge.s32.totalorder %s19_s17, 4   ;;  %s1855_s12 = smov %s1445_s13 }
 0x60b   : > { %s1856_s13 = smov %s1449_s14  ;;  %s1857_s14 = smov %s1544_s23 }
 0x60c   : > { %s1858_s15 = smov %s1457_s16  ;;  %18 = sbr.rel (!%p16_p0) target bundleno = 8 (0x8), region = 104 }
 0x60f   : > { %s1859_s16 = smov %s1854_s5 }
 0x611   :  { %1003 = vsyncpa [#allocation6], 1 }
 0x612   :  { %1005 = vsyncpa [#allocation6 + $0x1], 1 }
 0x613   :  { %1006 = vsyncpa [#allocation8], 1 }
 0x614   :  { %1008 = vsyncpa [#allocation8 + $0x1], 1 }

</bundles_post_ra>
